<compile_context>
chip_gen: v5e
topology: v5e:2x2
jax: 0.10.0
libtpu: 0.0.40
codegen_flags: <defaults>
</compile_context>

<pallas_src>
import functools

import jax
import jax.numpy as jnp
from jax.experimental import pallas as pl
from jax.experimental.pallas import tpu as pltpu


def _round_up(n, m):
    return ((n + m - 1) // m) * m


def _cdiv(a, b):
    return (a + b - 1) // b


def _num_tensorcores():
    # v7x has 2 TensorCores per chip that a "parallel" grid axis shards across;
    # v5e / v6e have 1.  Unknown device kind -> assume 1 (always correct).
    try:
        kind = jax.devices()[0].device_kind.lower()
    except Exception:
        return 1
    return 2 if "v7" in kind else 1


# ---------------------------------------------------------------------------
# Kernel
# ---------------------------------------------------------------------------
def _policy_kernel(params_ref, x_ref, o_ref, *, num_inputs, width, r_w2, r_w3, r_b):
    # Static slices of the single packed parameter buffer (zero runtime cost).
    w1 = params_ref[0:num_inputs, :]          # (num_inputs, width)
    w2 = params_ref[r_w2:r_w2 + width, :]     # (width, width)   zero-padded
    w3 = params_ref[r_w3:r_w3 + width, :]     # (width, width)   zero-padded
    b1 = params_ref[r_b:r_b + 1, :]           # (1, width)
    b2 = params_ref[r_b + 1:r_b + 2, :]       # (1, width)
    b3 = params_ref[r_b + 2:r_b + 3, :]       # (1, width)  -1e30 in pad lanes

    x = x_ref[...]                            # (TB, num_inputs), f32

    # Layer 1: Linear + ReLU   (lane-dense 128-wide hidden)
    h1 = jnp.maximum(
        jnp.dot(x, w1, preferred_element_type=jnp.float32) + b1, 0.0)
    # Layer 2: Linear + ReLU
    h2 = jnp.maximum(
        jnp.dot(h1, w2, preferred_element_type=jnp.float32) + b2, 0.0)
    # Layer 3: Linear (padded action lanes get -1e30 from b3)
    logits = jnp.dot(h2, w3, preferred_element_type=jnp.float32) + b3

    # Numerically stable softmax over the lane axis; padded lanes -> exp(.)=0,
    # so they contribute nothing to the sum and get probability exactly 0.
    m = jnp.max(logits, axis=-1, keepdims=True)
    e = jnp.exp(logits - m)
    o_ref[...] = e / jnp.sum(e, axis=-1, keepdims=True)   # exact normalization


# ---------------------------------------------------------------------------
# Layout + one-time parameter packing (call at init, NOT per forward)
# ---------------------------------------------------------------------------
def make_policy_layout(num_inputs, num_actions, hidden_size):
    width = _round_up(max(hidden_size, num_actions), 128)
    r_w2 = _round_up(num_inputs, 8)           # W2 starts on an 8-row boundary
    r_w3 = r_w2 + width
    r_b = r_w3 + width
    total = _round_up(r_b + 3, 8)
    return dict(width=width, r_w2=r_w2, r_w3=r_w3, r_b=r_b, total=total)


def pack_policy_params(params, num_inputs, num_actions, hidden_size):
    """Pack (w1,b1,w2,b2,w3,b3) into ONE contiguous (total, width) f32 buffer.

    Weights are (in, out) = transpose of the PyTorch nn.Linear layout.
    Call once at init (or whenever the parameters change)."""
    w1, b1, w2, b2, w3, b3 = params
    lay = make_policy_layout(num_inputs, num_actions, hidden_size)
    width, r_w2, r_w3, r_b, total = (lay["width"], lay["r_w2"], lay["r_w3"],
                                     lay["r_b"], lay["total"])

    buf = jnp.zeros((total, width), jnp.float32)
    buf = buf.at[0:num_inputs, 0:hidden_size].set(w1)
    buf = buf.at[r_w2:r_w2 + hidden_size, 0:hidden_size].set(w2)
    buf = buf.at[r_w3:r_w3 + hidden_size, 0:num_actions].set(w3)
    buf = buf.at[r_b, 0:hidden_size].set(b1.reshape(-1))
    buf = buf.at[r_b + 1, 0:hidden_size].set(b2.reshape(-1))
    # b3 row: real biases in the first num_actions lanes, -1e30 in pad lanes so
    # the padded logits vanish under softmax.
    b3_row = jnp.full((width,), -1e30, jnp.float32).at[0:num_actions].set(
        b3.reshape(-1))
    buf = buf.at[r_b + 2].set(b3_row)
    return buf, lay


# ---------------------------------------------------------------------------
# Forward builder: returns ONE jitted callable  forward(packed, x) -> probs
# ---------------------------------------------------------------------------
def make_policy_forward(num_inputs, num_actions, hidden_size, *, max_tile_b=4096):
    lay = make_policy_layout(num_inputs, num_actions, hidden_size)
    width, total = lay["width"], lay["total"]
    n_cores = _num_tensorcores()

    kernel = functools.partial(
        _policy_kernel,
        num_inputs=num_inputs, width=width,
        r_w2=lay["r_w2"], r_w3=lay["r_w3"], r_b=lay["r_b"])

    @jax.jit
    def forward(packed, x):
        """packed: output of pack_policy_params; x: [B, num_inputs] f32."""
        B = x.shape[0]

        # Grid policy: exactly one step per TensorCore (1 on v5e/v6e, 2 on v7x),
        # capped so a single tile never exceeds max_tile_b rows (VMEM safety).
        tb = _round_up(max(_cdiv(B, n_cores), 8), 8)
        tb = min(tb, max_tile_b)
        n_steps = _cdiv(B, tb)
        b_pad = n_steps * tb
        x_p = x if b_pad == B else jnp.pad(x, ((0, b_pad - B), (0, 0)))

        cost = pl.CostEstimate(
            flops=2 * b_pad * width * (num_inputs + 2 * width),
            transcendentals=b_pad * width,
            bytes_accessed=4 * (b_pad * num_inputs + total * width
                                + b_pad * width),
        )

        out = pl.pallas_call(
            kernel,
            out_shape=jax.ShapeDtypeStruct((b_pad, width), jnp.float32),
            grid=(n_steps,),
            in_specs=[
                # Packed params: constant block index -> DMA'd once, VMEM-resident.
                pl.BlockSpec((total, width), lambda i: (0, 0)),
                # Activations: one batch tile per grid step.
                pl.BlockSpec((tb, num_inputs), lambda i: (i, 0)),
            ],
            out_specs=pl.BlockSpec((tb, width), lambda i: (i, 0)),
            compiler_params=pltpu.CompilerParams(
                dimension_semantics=("parallel",)),   # both TCs on v7x
            cost_estimate=cost,
        )(packed, x_p)

        # Slice back to the logical shape (fused into the same jit program).
        return out[:B, :num_actions]

    return forward


# ---------------------------------------------------------------------------
# Parameter init (matches nn.Linear default: U(-1/sqrt(fan_in), 1/sqrt(fan_in)))
# Weights stored as (in, out) = transpose of the PyTorch layout.
# ---------------------------------------------------------------------------
def init_policy_params(key, num_inputs, num_actions, hidden_size):
    ks = jax.random.split(key, 6)

    def lin(kw, kb, fan_in, fan_out):
        bound = 1.0 / jnp.sqrt(jnp.float32(fan_in))
        w = jax.random.uniform(kw, (fan_in, fan_out), jnp.float32, -bound, bound)
        b = jax.random.uniform(kb, (1, fan_out), jnp.float32, -bound, bound)
        return w, b

    w1, b1 = lin(ks[0], ks[1], num_inputs, hidden_size)
    w2, b2 = lin(ks[2], ks[3], hidden_size, hidden_size)
    w3, b3 = lin(ks[4], ks[5], hidden_size, num_actions)
    return (w1, b1, w2, b2, w3, b3)


# TODO(synk): Policy.act() (numpy categorical sampling on host) is not part of
# the forward pass and is intentionally left out of the kernel.

if __name__ == "__main__":
    key = jax.random.PRNGKey(0)
    num_inputs, num_actions, hidden_size = 16, 8, 32
    batch = 37   # deliberately not a multiple of 8 to exercise batch padding

    k_params, k_x = jax.random.split(key)
    params = init_policy_params(k_params, num_inputs, num_actions, hidden_size)
    x = jax.random.normal(k_x, (batch, num_inputs), jnp.float32)

    # One-time setup (hoisted out of the per-call path).
    packed, _ = pack_policy_params(params, num_inputs, num_actions, hidden_size)
    forward = make_policy_forward(num_inputs, num_actions, hidden_size)

    probs = forward(packed, x)
    probs = jax.block_until_ready(probs)
    # Second call reuses the compiled program + packed buffer (no repacking).
    probs = jax.block_until_ready(forward(packed, x))

    # Reference check in plain JAX (same math as the PyTorch module).
    w1, b1, w2, b2, w3, b3 = params
    h1 = jnp.maximum(x @ w1 + b1, 0.0)
    h2 = jnp.maximum(h1 @ w2 + b2, 0.0)
    ref = jax.nn.softmax(h2 @ w3 + b3, axis=-1)

    assert probs.shape == (batch, num_actions)
    assert jnp.allclose(jnp.sum(probs, axis=-1), 1.0, atol=1e-6)
    assert jnp.allclose(probs, ref, atol=1e-6, rtol=1e-5)

    print("KERNEL_OK")
</pallas_src>

<mosaic_0001>
module attributes {stable_mosaic.version = 11 : i64} {
  func.func @_policy_kernel(%arg0: i32, %arg1: memref<280x128xf32, #tpu.memory_space<vmem>>, %arg2: memref<40x16xf32, #tpu.memory_space<vmem>>, %arg3: memref<40x128xf32, #tpu.memory_space<vmem>>) attributes {dimension_semantics = [#tpu.dimension_semantics<parallel>], iteration_bounds = array<i64: 1>, scalar_prefetch = 0 : i64, scratch_operands = 0 : i64, tpu.core_type = #tpu.core_type<tc>, window_params = [{pipeline_mode = #tpu.pipeline_mode<synchronous>, transform_indices = @transform_0, window_bounds = array<i64: 280, 128>}, {transform_indices = @transform_1, window_bounds = array<i64: 40, 16>}, {transform_indices = @transform_2, window_bounds = array<i64: 40, 128>}]} {
    %c0 = arith.constant 0 : index
    %c0_0 = arith.constant 0 : index
    %0 = vector.load %arg1[%c0, %c0_0] : memref<280x128xf32, #tpu.memory_space<vmem>>, vector<16x128xf32>
    %c16 = arith.constant 16 : index
    %c0_1 = arith.constant 0 : index
    %1 = vector.load %arg1[%c16, %c0_1] : memref<280x128xf32, #tpu.memory_space<vmem>>, vector<128x128xf32>
    %c144 = arith.constant 144 : index
    %c0_2 = arith.constant 0 : index
    %2 = vector.load %arg1[%c144, %c0_2] : memref<280x128xf32, #tpu.memory_space<vmem>>, vector<128x128xf32>
    %c272 = arith.constant 272 : index
    %c0_3 = arith.constant 0 : index
    %3 = vector.load %arg1[%c272, %c0_3] : memref<280x128xf32, #tpu.memory_space<vmem>>, vector<1x128xf32>
    %c273 = arith.constant 273 : index
    %c0_4 = arith.constant 0 : index
    %4 = vector.load %arg1[%c273, %c0_4] : memref<280x128xf32, #tpu.memory_space<vmem>>, vector<1x128xf32>
    %c274 = arith.constant 274 : index
    %c0_5 = arith.constant 0 : index
    %5 = vector.load %arg1[%c274, %c0_5] : memref<280x128xf32, #tpu.memory_space<vmem>>, vector<1x128xf32>
    %c0_6 = arith.constant 0 : index
    %c0_7 = arith.constant 0 : index
    %6 = vector.load %arg2[%c0_6, %c0_7] : memref<40x16xf32, #tpu.memory_space<vmem>>, vector<40x16xf32>
    %cst = arith.constant dense<0.000000e+00> : vector<40x128xf32>
    %7 = tpu.matmul %6, %0, %cst {dimension_numbers = #tpu.dot_dimension_numbers<[1], [0], [0], [1], [0, 0, 1, 1], [], []>} : vector<40x16xf32>, vector<16x128xf32>, vector<40x128xf32> -> vector<40x128xf32>
    %8 = vector.broadcast %3 : vector<1x128xf32> to vector<40x128xf32>
    %9 = arith.addf %7, %8 : vector<40x128xf32>
    %cst_8 = arith.constant 0.000000e+00 : f32
    %10 = vector.broadcast %cst_8 : f32 to vector<40x128xf32>
    %11 = arith.maximumf %9, %10 : vector<40x128xf32>
    %cst_9 = arith.constant dense<0.000000e+00> : vector<40x128xf32>
    %12 = tpu.matmul %11, %1, %cst_9 {dimension_numbers = #tpu.dot_dimension_numbers<[1], [0], [0], [1], [0, 0, 1, 1], [], []>} : vector<40x128xf32>, vector<128x128xf32>, vector<40x128xf32> -> vector<40x128xf32>
    %13 = vector.broadcast %4 : vector<1x128xf32> to vector<40x128xf32>
    %14 = arith.addf %12, %13 : vector<40x128xf32>
    %cst_10 = arith.constant 0.000000e+00 : f32
    %15 = vector.broadcast %cst_10 : f32 to vector<40x128xf32>
    %16 = arith.maximumf %14, %15 : vector<40x128xf32>
    %cst_11 = arith.constant dense<0.000000e+00> : vector<40x128xf32>
    %17 = tpu.matmul %16, %2, %cst_11 {dimension_numbers = #tpu.dot_dimension_numbers<[1], [0], [0], [1], [0, 0, 1, 1], [], []>} : vector<40x128xf32>, vector<128x128xf32>, vector<40x128xf32> -> vector<40x128xf32>
    %18 = vector.broadcast %5 : vector<1x128xf32> to vector<40x128xf32>
    %19 = arith.addf %17, %18 : vector<40x128xf32>
    %cst_12 = arith.constant dense<0xFF800000> : vector<40xf32>
    %20 = vector.multi_reduction <maximumf>, %19, %cst_12 [1] : vector<40x128xf32> to vector<40xf32>
    %21 = vector.shape_cast %20 : vector<40xf32> to vector<40x1xf32>
    %22 = vector.broadcast %21 : vector<40x1xf32> to vector<40x128xf32>
    %23 = arith.subf %19, %22 : vector<40x128xf32>
    %24 = math.exp %23 : vector<40x128xf32>
    %cst_13 = arith.constant dense<0.000000e+00> : vector<40xf32>
    %25 = vector.multi_reduction <add>, %24, %cst_13 [1] : vector<40x128xf32> to vector<40xf32>
    %26 = vector.shape_cast %25 : vector<40xf32> to vector<40x1xf32>
    %27 = vector.broadcast %26 : vector<40x1xf32> to vector<40x128xf32>
    %28 = arith.divf %24, %27 : vector<40x128xf32>
    %c0_14 = arith.constant 0 : index
    %c0_15 = arith.constant 0 : index
    %29 = vector.load %arg3[%c0_14, %c0_15] : memref<40x128xf32, #tpu.memory_space<vmem>>, vector<40x128xf32>
    tpu.vector_store %arg3[%c0_14, %c0_15], %28 {strides = array<i32>} : memref<40x128xf32, #tpu.memory_space<vmem>>, vector<40x128xf32>,
    return
  }
  func.func @transform_0(%arg0: i32) -> (i32, i32) {
    %c0_i32 = arith.constant 0 : i32
    %c0_i32_0 = arith.constant 0 : i32
    %c0_i32_1 = arith.constant 0 : i32
    return %c0_i32, %c0_i32_0 : i32, i32
  }
  func.func @transform_1(%arg0: i32) -> (i32, i32) {
    %c0_i32 = arith.constant 0 : i32
    %c0_i32_0 = arith.constant 0 : i32
    return %arg0, %c0_i32 : i32, i32
  }
  func.func @transform_2(%arg0: i32) -> (i32, i32) {
    %c0_i32 = arith.constant 0 : i32
    %c0_i32_0 = arith.constant 0 : i32
    return %arg0, %c0_i32 : i32, i32
  }
}

</mosaic_0001>

<bundles_post_ra>
// kernel: forward.1
= control target key start
LH: loop header
LB: loop body
LE: loop exit
PB: predicated region body
PF: predicated region fallthrough
CT: control target
= control target key end

     0   :  { %7 = vsyncpa [#allocation3], 0  ;;  %s405_s12 = smov [#allocation2]   ;;  %s406_s14 = smov 128   ;;  %s473_s0 = inlined_call_operand.hbm [shape: f32[280,128], index: 0, kind: input, shape index: {}]   ;;  %s474_s1 = inlined_call_operand.vmem [shape: f32[40,16], index: 1, kind: input, shape index: {}]   ;;  %s475_s2 = inlined_call_operand.vmem [shape: f32[40,128], index: 2, kind: output, shape index: {}]  }
   0x1   :  { %s12_s11 = sshll.u32 %s473_s0, 4  ;;  %s14_s13 = sshll.u32 %s405_s12, 4  ;;  %s13_s11 = int_to_ptr.hbm [resolvable:$true] %s12_s11  ;;  %s15_s13 = int_to_ptr.vmem [resolvable:$true] %s14_s13 }
   0x2   :  { %s407_s15 = smov 8  }
   0x3   :  { %20 = dma.hbm_to_vmem [thread:$0]  %s13_s11, 4480, %s15_s13, [#allocation3], %s406_s14, %s406_s14, %s407_s15  }
   0x4   :  { %403 = dma.done.wait [#allocation3], 4480  }
   0x5   :  { %404 = vsyncadd [#allocation3], 4294962816  ;;  %v28_v0 = vld [vmem:[#allocation2 + $0x8] sm:$0xff]  ;;  %v27_v1 = vld [vmem:[#allocation2] sm:$0xff]  ;;  %vm70_vm0 = vcmask 130048  }
   0x6   :  { %100 = vmatpush.msra.mxu0 %v28_v0  ;;  %v64_v2 = vld [vmem:[%s474_s1] sm:$0xff]  ;;  %319 = vmatpush.msra.mxu3 %v28_v0  ;;  %v44_v4 = vld [vmem:[#allocation2 + $0x88] sm:$0xff]  ;;  %v42_v6 = vld [vmem:[#allocation2 + $0x78] sm:$0xff] }
   0x7   :  { %v68_v3 = vld [vmem:[%s474_s1 + $0x20] sm:$0xff]  ;;  %124 = vmatpush.msra.mxu1 %v44_v4  ;;  %v41_v7 = vld [vmem:[#allocation2 + $0x70] sm:$0xff]  ;;  %v65_v8 = vld [vmem:[%s474_s1 + $0x8] sm:$0xff] }
   0x8   :  { %101 = vmatpush.msra.mxu0 %v27_v1  ;;  %320 = vmatpush.msra.mxu3 %v27_v1  ;;  %v43_v5 = vld [vmem:[#allocation2 + $0x80] sm:$0xff]  ;;  %v40_v9 = vld [vmem:[#allocation2 + $0x68] sm:$0xff]  ;;  %v38_v11 = vld [vmem:[#allocation2 + $0x58] sm:$0xff] }
   0x9   :  { %314 = vmatmul.msk.f32.vlgmr.msra.gmra.mxu0 %vm70_vm0, %v64_v2  ;;  %318 = vmatmul.msk.f32.vlgmr.msra.gmra.mxu3 %vm70_vm0, %v68_v3  ;;  %v39_v10 = vld [vmem:[#allocation2 + $0x60] sm:$0xff]  ;;  %v37_v12 = vld [vmem:[#allocation2 + $0x50] sm:$0xff]  ;;  %v36_v14 = vld [vmem:[#allocation2 + $0x48] sm:$0xff] }
   0xa   :  { %321 = vmatpush.msrb.mxu3 %v44_v4  ;;  %125 = vmatpush.msra.mxu1 %v43_v5  ;;  %v66_v13 = vld [vmem:[%s474_s1 + $0x10] sm:$0xff]  ;;  %v35_v15 = vld [vmem:[#allocation2 + $0x40] sm:$0xff]  ;;  %v34_v16 = vld [vmem:[#allocation2 + $0x38] sm:$0xff] }
   0xb   :  { %v33_v17 = vld [vmem:[#allocation2 + $0x30] sm:$0xff]  ;;  %v67_v18 = vld [vmem:[%s474_s1 + $0x18] sm:$0xff]  ;;  %v32_v19 = vld [vmem:[#allocation2 + $0x28] sm:$0xff] }
   0xc   :  { %322 = vmatpush.msrb.mxu3 %v43_v5  ;;  %126 = vmatpush.msra.mxu1 %v42_v6  ;;  %v31_v20 = vld [vmem:[#allocation2 + $0x20] sm:$0xff]  ;;  %v30_v21 = vld [vmem:[#allocation2 + $0x18] sm:$0xff]  ;;  %v29_v22 = vld [vmem:[#allocation2 + $0x10] sm:$0xff] }
   0xd   :  { %v356_v23 = vld [vmem:[#allocation2 + $0x110] ss:$0 sm:$0xff]  ;;  %v60_v27 = vld [vmem:[#allocation2 + $0x108] sm:$0xff]  ;;  %v59_v28 = vld [vmem:[#allocation2 + $0x100] sm:$0xff] }
   0xe   :  { %323 = vmatpush.msrb.mxu3 %v42_v6  ;;  %127 = vmatpush.msra.mxu1 %v41_v7  ;;  %v58_v29 = vld [vmem:[#allocation2 + $0xf8] sm:$0xff]  ;;  %v57_v32 = vld [vmem:[#allocation2 + $0xf0] sm:$0xff]  ;;  %v56_v34 = vld [vmem:[#allocation2 + $0xe8] sm:$0xff] }
   0xf   :  { %162 = vmatpush.msrb.mxu0 %v60_v27  ;;  %337 = vmatpush.msra.mxu2 %v60_v27  ;;  %v55_v35 = vld [vmem:[#allocation2 + $0xe0] sm:$0xff]  ;;  %v54_v36 = vld [vmem:[#allocation2 + $0xd8] sm:$0xff]  ;;  %v53_v39 = vld [vmem:[#allocation2 + $0xd0] sm:$0xff] }
  0x10   :  { %324 = vmatpush.msrb.mxu3 %v41_v7  ;;  %128 = vmatpush.msra.mxu1 %v40_v9  ;;  %v52_v41 = vld [vmem:[#allocation2 + $0xc8] sm:$0xff]  ;;  %v51_v42 = vld [vmem:[#allocation2 + $0xc0] sm:$0xff]  ;;  %v50_v43 = vld [vmem:[#allocation2 + $0xb8] sm:$0xff] }
  0x11   :  { %315 = vmatmul.msk.f32.gmra.mxu0 %vm70_vm0, %v65_v8  ;;  %338 = vmatpush.msra.mxu2 %v59_v28  ;;  %v49_v46 = vld [vmem:[#allocation2 + $0xb0] sm:$0xff]  ;;  %v48_v49 = vld [vmem:[#allocation2 + $0xa8] sm:$0xff]  ;;  %v47_v52 = vld [vmem:[#allocation2 + $0xa0] sm:$0xff] }
  0x12   :  { %325 = vmatpush.msrb.mxu3 %v40_v9  ;;  %129 = vmatpush.msra.mxu1 %v39_v10  ;;  %v46_v53 = vld [vmem:[#allocation2 + $0x98] sm:$0xff]  ;;  %v45_v54 = vld [vmem:[#allocation2 + $0x90] sm:$0xff] }
  0x13   :  { %163 = vmatpush.msrb.mxu0 %v59_v28  ;;  %339 = vmatpush.msra.mxu2 %v58_v29  ;;  %v357_v55 = vld [vmem:[#allocation2 + $0x111] ss:$0 sm:$0xff]  ;;  %v358_v7 = vld [vmem:[#allocation2 + $0x112] ss:$0 sm:$0xff] }
  0x14   :  { %326 = vmatpush.msrb.mxu3 %v39_v10  ;;  %130 = vmatpush.msra.mxu1 %v38_v11 }
  0x15   :  { %164 = vmatpush.msrb.mxu0 %v58_v29  ;;  %340 = vmatpush.msra.mxu2 %v57_v32 }
  0x16   :  { %327 = vmatpush.msrb.mxu3 %v38_v11  ;;  %131 = vmatpush.msra.mxu1 %v37_v12 }
  0x17   :  { %165 = vmatpush.msrb.mxu0 %v57_v32  ;;  %341 = vmatpush.msra.mxu2 %v56_v34 }
  0x18   :  { %328 = vmatpush.msrb.mxu3 %v37_v12  ;;  %132 = vmatpush.msra.mxu1 %v36_v14 }
  0x19   :  { %316 = vmatmul.msk.f32.gmra.mxu0 %vm70_vm0, %v66_v13  ;;  %342 = vmatpush.msra.mxu2 %v55_v35 }
  0x1a   :  { %329 = vmatpush.msrb.mxu3 %v36_v14  ;;  %133 = vmatpush.msra.mxu1 %v35_v15 }
  0x1b   :  { %166 = vmatpush.msrb.mxu0 %v56_v34  ;;  %343 = vmatpush.msra.mxu2 %v54_v36 }
  0x1c   :  { %330 = vmatpush.msrb.mxu3 %v35_v15  ;;  %134 = vmatpush.msra.mxu1 %v34_v16 }
  0x1d   :  { %167 = vmatpush.msrb.mxu0 %v55_v35  ;;  %344 = vmatpush.msra.mxu2 %v53_v39 }
  0x1e   :  { %331 = vmatpush.msrb.mxu3 %v34_v16  ;;  %135 = vmatpush.msra.mxu1 %v33_v17 }
  0x1f   :  { %168 = vmatpush.msrb.mxu0 %v54_v36  ;;  %345 = vmatpush.msra.mxu2 %v52_v41 }
  0x20   :  { %332 = vmatpush.msrb.mxu3 %v33_v17  ;;  %136 = vmatpush.msra.mxu1 %v32_v19 }
  0x21   :  { %317 = vmatmul.msk.f32.gmra.mxu0 %vm70_vm0, %v67_v18  ;;  %346 = vmatpush.msra.mxu2 %v51_v42 }
  0x22   :  { %333 = vmatpush.msrb.mxu3 %v32_v19  ;;  %137 = vmatpush.msra.mxu1 %v31_v20 }
  0x23   :  { %169 = vmatpush.msrb.mxu0 %v53_v39  ;;  %347 = vmatpush.msra.mxu2 %v50_v43 }
  0x24   :  { %334 = vmatpush.msrb.mxu3 %v31_v20  ;;  %138 = vmatpush.msra.mxu1 %v30_v21 }
  0x25   :  { %170 = vmatpush.msrb.mxu0 %v52_v41  ;;  %348 = vmatpush.msra.mxu2 %v49_v46 }
  0x26   :  { %335 = vmatpush.msrb.mxu3 %v30_v21  ;;  %139 = vmatpush.msra.mxu1 %v29_v22 }
  0x27   :  { %171 = vmatpush.msrb.mxu0 %v51_v42  ;;  %349 = vmatpush.msra.mxu2 %v48_v49 }
  0x28   :  { %336 = vmatpush.msrb.mxu3 %v29_v22 }
  0x29   :  { %172 = vmatpush.msrb.mxu0 %v50_v43  ;;  %350 = vmatpush.msra.mxu2 %v47_v52 }
  0x2b   :  { %173 = vmatpush.msrb.mxu0 %v49_v46  ;;  %351 = vmatpush.msra.mxu2 %v46_v53 }
  0x2d   :  { %174 = vmatpush.msrb.mxu0 %v48_v49  ;;  %352 = vmatpush.msra.mxu2 %v45_v54 }
  0x2f   :  { %175 = vmatpush.msrb.mxu0 %v47_v52 }
  0x31   :  { %176 = vmatpush.msrb.mxu0 %v46_v53 }
  0x33   :  { %177 = vmatpush.msrb.mxu0 %v45_v54 }
  0x86   :  { %v103_v24 = vpop.f32.mrf.mxu0 }
  0x87   :  { %v104_v25 = vadd.f32 %v356_v23, %v103_v24 }
  0x89   :  { %v118_v26 = vmax.f32 %v104_v25, 0.0 }
  0x8b   :  { %140 = vmatmul.f32.vlgmr.msra.gmra.mxu1 %v118_v26 }
  0x8c   :  { %v115_v47 = vpop.f32.mrf.mxu3 }
  0x8d   :  { %v116_v50 = vadd.f32 %v356_v23, %v115_v47 }
  0x8e   :  { %v106_v30 = vpop.f32.mrf.mxu0 }
  0x8f   :  { %v107_v31 = vadd.f32 %v356_v23, %v106_v30  ;;  %v122_v51 = vmax.f32 %v116_v50, 0.0 }
  0x91   :  { %v119_v33 = vmax.f32 %v107_v31, 0.0 }
  0x93   :  { %143 = vmatmul.f32.gmra.mxu1 %v119_v33 }
  0x96   :  { %v109_v37 = vpop.f32.mrf.mxu0 }
  0x97   :  { %v110_v38 = vadd.f32 %v356_v23, %v109_v37 }
  0x99   :  { %v120_v40 = vmax.f32 %v110_v38, 0.0 }
  0x9b   :  { %146 = vmatmul.f32.gmra.mxu1 %v120_v40 }
  0x9e   :  { %v112_v44 = vpop.f32.mrf.mxu0 }
  0x9f   :  { %v113_v45 = vadd.f32 %v356_v23, %v112_v44 }
  0xa1   :  { %v121_v48 = vmax.f32 %v113_v45, 0.0 }
  0xa3   :  { %149 = vmatmul.f32.vlgmr.msrb.gmra.mxu3 %v121_v48 }
  0xab   :  { %152 = vmatmul.f32.gmra.mxu3 %v122_v51 }
 0x108   :  { %v141_v56 = vpop.f32.mrf.mxu1 }
 0x109   :  { %v142_v57 = vadd.f32 %v357_v55, %v141_v56 }
 0x10b   :  { %v156_v58 = vmax.f32 %v142_v57, 0.0 }
 0x10d   :  { %178 = vmatmul.f32.vlgmr.msrb.gmra.mxu0 %v156_v58 }
 0x110   :  { %v144_v59 = vpop.f32.mrf.mxu1 }
 0x111   :  { %v145_v60 = vadd.f32 %v357_v55, %v144_v59 }
 0x113   :  { %v157_v61 = vmax.f32 %v145_v60, 0.0 }
 0x115   :  { %181 = vmatmul.f32.gmra.mxu0 %v157_v61 }
 0x118   :  { %v147_v62 = vpop.f32.mrf.mxu1 }
 0x119   :  { %v148_v63 = vadd.f32 %v357_v55, %v147_v62 }
 0x11b   :  { %v158_v0 = vmax.f32 %v148_v63, 0.0 }
 0x11d   :  { %184 = vmatmul.f32.vlgmr.msra.gmra.mxu2 %v158_v0 }
 0x126   :  { %v150_v1 = vpop.f32.mrf.mxu3 }
 0x127   :  { %v151_v2 = vadd.f32 %v357_v55, %v150_v1 }
 0x129   :  { %v159_v3 = vmax.f32 %v151_v2, 0.0 }
 0x12b   :  { %187 = vmatmul.f32.gmra.mxu2 %v159_v3 }
 0x12e   :  { %v153_v4 = vpop.f32.mrf.mxu3 }
 0x12f   :  { %v154_v5 = vadd.f32 %v357_v55, %v153_v4 }
 0x131   :  { %v160_v6 = vmax.f32 %v154_v5, 0.0 }
 0x133   :  { %190 = vmatmul.f32.gmra.mxu2 %v160_v6 }
 0x18a   :  { %v179_v8 = vpop.f32.mrf.mxu0 }
 0x18b   :  { %v180_v9 = vadd.f32 %v358_v7, %v179_v8 }
 0x18d   :  { %194 = vmax.xlane.f32.xlu0 %v180_v9 }
 0x192   :  { %v182_v10 = vpop.f32.mrf.mxu0 }
 0x193   :  { %v183_v11 = vadd.f32 %v358_v7, %v182_v10 }
 0x195   :  { %196 = vmax.xlane.f32.xlu0 %v183_v11 }
 0x1a0   :  { %v185_v12 = vpop.f32.mrf.mxu2 }
 0x1a1   :  { %v186_v13 = vadd.f32 %v358_v7, %v185_v12 }
 0x1a3   :  { %198 = vmax.xlane.f32.xlu1 %v186_v13 }
 0x1ae   :  { %v188_v14 = vpop.f32.mrf.mxu2 }
 0x1af   :  { %v189_v15 = vadd.f32 %v358_v7, %v188_v14 }
 0x1b1   :  { %200 = vmax.xlane.f32.xlu1 %v189_v15 }
 0x1b6   :  { %v191_v16 = vpop.f32.mrf.mxu2 }
 0x1b7   :  { %v192_v17 = vadd.f32 %v358_v7, %v191_v16 }
 0x1b9   :  { %202 = vmax.xlane.f32.xlu2 %v192_v17 }
 0x200   :  { %v195_v18 = vpop.xlane.xlu0 %194 }
 0x201   :  { %v204_v19 = vsub.f32 %v180_v9, %v195_v18 }
 0x203   :  { %v209_v20 = vmul.f32 1.442695, %v204_v19 }
 0x205   :  { %359 = vpow2.f32 %v209_v20 }
 0x208   :  { %v197_v21 = vpop.xlane.xlu0 %196 }
 0x209   :  { %v205_v22 = vsub.f32 %v183_v11, %v197_v21 }
 0x20b   :  { %v360_v23 = vpop.eup %359  ;;  %v211_v24 = vmul.f32 1.442695, %v205_v22 }
 0x20c   :  { %219 = vadd.xlane.f32.xlu2 %v360_v23 }
 0x20d   :  { %361 = vpow2.f32 %v211_v24 }
 0x213   :  { %v362_v25 = vpop.eup %361 }
 0x214   :  { %221 = vadd.xlane.f32.xlu0 %v362_v25 }
 0x216   :  { %v199_v26 = vpop.xlane.xlu1 %198 }
 0x217   :  { %v206_v27 = vsub.f32 %v186_v13, %v199_v26 }
 0x219   :  { %v213_v28 = vmul.f32 1.442695, %v206_v27 }
 0x21b   :  { %363 = vpow2.f32 %v213_v28 }
 0x221   :  { %v446_v29 = vpop.eup %363 }
 0x222   :  { %223 = vadd.xlane.f32.xlu1 %v446_v29 }
 0x224   :  { %v201_v30 = vpop.xlane.xlu1 %200 }
 0x225   :  { %v207_v31 = vsub.f32 %v189_v15, %v201_v30 }
 0x227   :  { %v215_v32 = vmul.f32 1.442695, %v207_v31 }
 0x229   :  { %365 = vpow2.f32 %v215_v32 }
 0x22c   :  { %v203_v33 = vpop.xlane.xlu2 %202 }
 0x22d   :  { %v208_v34 = vsub.f32 %v192_v17, %v203_v33 }
 0x22f   :  { %v449_v35 = vpop.eup %365  ;;  %v217_v36 = vmul.f32 1.442695, %v208_v34 }
 0x230   :  { %225 = vadd.xlane.f32.xlu2 %v449_v35 }
 0x231   :  { %367 = vpow2.f32 %v217_v36 }
 0x237   :  { %v452_v37 = vpop.eup %367 }
 0x238   :  { %227 = vadd.xlane.f32.xlu0 %v452_v37 }
 0x27f   :  { %v220_v38 = vpop.xlane.xlu2 %219 }
 0x280   :  { %369 = vrcp.f32 %v220_v38  ;;  %v240_v43 = vand.u32 2147483648, %v220_v38  ;;  %v238_v45 = vand.u32 2147483647, %v220_v38  ;;  %vm234_vm2 = vweird.f32 %v220_v38 }
 0x282   :  { %v241_v48 = vor.u32 1.1754944e-38, %v240_v43  ;;  %vm239_vm4 = vcmp.eq.f32.partialorder %v238_v45, 8.507059e+37 }
 0x286   :  { %v370_v39 = vpop.eup %369 }
 0x287   :  { %v230_v40 = vmul.f32 %v370_v39, %v220_v38  ;;  %v222_v41 = vpop.xlane.xlu0 %221  ;;  %vm235_vm1 = vweird.f32 %v370_v39 }
 0x288   :  { %371 = vrcp.f32 %v222_v41  ;;  %vm236_vm3 = vmor %vm234_vm2, %vm235_vm1  ;;  %v255_v54 = vand.u32 2147483648, %v222_v41  ;;  %v253_v56 = vand.u32 2147483647, %v222_v41  ;;  %vm249_vm6 = vweird.f32 %v222_v41 }
 0x289   :  { %v231_v42 = vsub.f32 1.0, %v230_v40 }
 0x28a   :  { %v256_v59 = vor.u32 1.1754944e-38, %v255_v54  ;;  %vm254_vm8 = vcmp.eq.f32.partialorder %v253_v56, 8.507059e+37 }
 0x28b   :  { %v232_v44 = vmul.f32 %v370_v39, %v231_v42 }
 0x28d   :  { %v233_v46 = vadd.f32 %v370_v39, %v232_v44 }
 0x28e   :  { %v372_v47 = vpop.eup %371 }
 0x28f   :  { %v237_v49 = vsel %vm236_vm3, %v370_v39, %v233_v46  ;;  %v245_v50 = vmul.f32 %v372_v47, %v222_v41  ;;  %vm250_vm5 = vweird.f32 %v372_v47 }
 0x290   :  { %v242_v51 = vsel %vm239_vm4, %v241_v48, %v237_v49  ;;  %vm251_vm7 = vmor %vm249_vm6, %vm250_vm5 }
 0x291   :  { %v243_v52 = vmul.f32 %v360_v23, %v242_v51  ;;  %v246_v53 = vsub.f32 1.0, %v245_v50 }
 0x293   :  { %304 = vst [vmem:[%s475_s2] sm:$0xff] %v243_v52  ;;  %v247_v55 = vmul.f32 %v372_v47, %v246_v53 }
 0x295   :  { %v248_v57 = vadd.f32 %v372_v47, %v247_v55  ;;  %v224_v58 = vpop.xlane.xlu1 %223 }
 0x296   :  { %373 = vrcp.f32 %v224_v58  ;;  %v270_v2 = vand.u32 2147483648, %v224_v58  ;;  %v268_v4 = vand.u32 2147483647, %v224_v58  ;;  %vm264_vm10 = vweird.f32 %v224_v58 }
 0x297   :  { %v252_v60 = vsel %vm251_vm7, %v372_v47, %v248_v57 }
 0x298   :  { %v257_v61 = vsel %vm254_vm8, %v256_v59, %v252_v60  ;;  %v271_v7 = vor.u32 1.1754944e-38, %v270_v2  ;;  %vm269_vm12 = vcmp.eq.f32.partialorder %v268_v4, 8.507059e+37 }
 0x299   :  { %v258_v62 = vmul.f32 %v362_v25, %v257_v61 }
 0x29b   :  { %305 = vst [vmem:[%s475_s2 + $0x8] sm:$0xff] %v258_v62 }
 0x29c   :  { %v374_v63 = vpop.eup %373 }
 0x29d   :  { %v260_v0 = vmul.f32 %v374_v63, %v224_v58  ;;  %vm265_vm9 = vweird.f32 %v374_v63 }
 0x29e   :  { %vm266_vm11 = vmor %vm264_vm10, %vm265_vm9 }
 0x29f   :  { %v261_v1 = vsub.f32 1.0, %v260_v0 }
 0x2a1   :  { %v262_v3 = vmul.f32 %v374_v63, %v261_v1 }
 0x2a3   :  { %v263_v5 = vadd.f32 %v374_v63, %v262_v3  ;;  %v226_v6 = vpop.xlane.xlu2 %225 }
 0x2a4   :  { %375 = vrcp.f32 %v226_v6  ;;  %v285_v15 = vand.u32 2147483648, %v226_v6  ;;  %v283_v17 = vand.u32 2147483647, %v226_v6  ;;  %vm279_vm14 = vweird.f32 %v226_v6 }
 0x2a5   :  { %v267_v8 = vsel %vm266_vm11, %v374_v63, %v263_v5 }
 0x2a6   :  { %v272_v9 = vsel %vm269_vm12, %v271_v7, %v267_v8  ;;  %v286_v20 = vor.u32 1.1754944e-38, %v285_v15  ;;  %vm284_vm0 = vcmp.eq.f32.partialorder %v283_v17, 8.507059e+37 }
 0x2a7   :  { %v273_v10 = vmul.f32 %v446_v29, %v272_v9 }
 0x2a9   :  { %306 = vst [vmem:[%s475_s2 + $0x10] sm:$0xff] %v273_v10 }
 0x2aa   :  { %v376_v11 = vpop.eup %375 }
 0x2ab   :  { %v275_v12 = vmul.f32 %v376_v11, %v226_v6  ;;  %v228_v13 = vpop.xlane.xlu0 %227  ;;  %vm280_vm13 = vweird.f32 %v376_v11 }
 0x2ac   :  { %377 = vrcp.f32 %v228_v13  ;;  %vm281_vm15 = vmor %vm279_vm14, %vm280_vm13  ;;  %v300_v26 = vand.u32 2147483648, %v228_v13  ;;  %v298_v28 = vand.u32 2147483647, %v228_v13  ;;  %vm294_vm2 = vweird.f32 %v228_v13 }
 0x2ad   :  { %v276_v14 = vsub.f32 1.0, %v275_v12 }
 0x2ae   :  { %v301_v30 = vor.u32 1.1754944e-38, %v300_v26  ;;  %vm299_vm4 = vcmp.eq.f32.partialorder %v298_v28, 8.507059e+37 }
 0x2af   :  { %v277_v16 = vmul.f32 %v376_v11, %v276_v14 }
 0x2b1   :  { %v278_v18 = vadd.f32 %v376_v11, %v277_v16 }
 0x2b2   :  { %v378_v19 = vpop.eup %377 }
 0x2b3   :  { %v282_v21 = vsel %vm281_vm15, %v376_v11, %v278_v18  ;;  %v290_v22 = vmul.f32 %v378_v19, %v228_v13  ;;  %vm295_vm1 = vweird.f32 %v378_v19 }
 0x2b4   :  { %v287_v23 = vsel %vm284_vm0, %v286_v20, %v282_v21  ;;  %vm296_vm3 = vmor %vm294_vm2, %vm295_vm1 }
 0x2b5   :  { %v288_v24 = vmul.f32 %v449_v35, %v287_v23  ;;  %v291_v25 = vsub.f32 1.0, %v290_v22 }
 0x2b7   :  { %307 = vst [vmem:[%s475_s2 + $0x18] sm:$0xff] %v288_v24  ;;  %v292_v27 = vmul.f32 %v378_v19, %v291_v25 }
 0x2b9   :  { %v293_v29 = vadd.f32 %v378_v19, %v292_v27 }
 0x2bb   :  { %v297_v31 = vsel %vm296_vm3, %v378_v19, %v293_v29 }
 0x2bc   :  { %v302_v32 = vsel %vm299_vm4, %v301_v30, %v297_v31 }
 0x2bd   :  { %v303_v33 = vmul.f32 %v452_v37, %v302_v32 }
 0x2bf   :  { %308 = vst [vmem:[%s475_s2 + $0x20] sm:$0xff] %v303_v33 }
 0x2c0   :  { %313 = vsyncpa [#allocation3], 1 }

</bundles_post_ra>
